<compile_context>
chip_gen: v7x
topology: tpu7x:2x2x1
jax: 0.10.0
libtpu: 0.0.40
codegen_flags: <defaults>
</compile_context>

<pallas_src>
import functools

import jax
import jax.numpy as jnp
from jax.experimental import pallas as pl
from jax.experimental.pallas import tpu as pltpu


def _se_kernel(x_ref, w1_ref, b1_ref, w2_ref, b2_ref, o_ref, *, inv_hw):
    # x_ref : (Bn, C, HW_pad)  -- HW zero-padded up to a multiple of 128
    # w1_ref: (C, C_sq), b1_ref: (1, C_sq)
    # w2_ref: (C_sq, C), b2_ref: (1, C)
    x = x_ref[...]                                                # (Bn, C, HWp)

    # ---- squeeze: global average pool over spatial dims ----
    # Padded lanes are zero, so sum over the padded axis / true HW == mean.
    means = jnp.sum(x.astype(jnp.float32), axis=-1) * inv_hw      # (Bn, C)

    # ---- reduce (1x1 conv) + leaky_relu(0.1), batched over Bn ----
    s = jnp.dot(means, w1_ref[...],
                preferred_element_type=jnp.float32) + b1_ref[...]  # (Bn, C_sq)
    s = jnp.where(s > 0, s, 0.1 * s)

    # ---- expand (1x1 conv) ----
    e = jnp.dot(s, w2_ref[...],
                preferred_element_type=jnp.float32) + b2_ref[...]  # (Bn, C)

    # ---- excite: sigmoid gate, broadcast over H*W ----
    scale = jax.nn.sigmoid(e)                                      # (Bn, C)
    o_ref[...] = (x * scale[:, :, None].astype(x.dtype))


def squeeze_and_excite(x, w_reduce, b_reduce, w_expand, b_expand,
                       *, target_block_bytes=1 << 21):
    """x: (N, C, H, W). w_reduce: (C_sq, C), w_expand: (C, C_sq)."""
    N, C, H, W = x.shape
    HW = H * W
    C_sq = w_reduce.shape[0]
    dtype = x.dtype
    itemsize = jnp.dtype(dtype).itemsize

    # Lane-dense spatial axis: pad HW up to a multiple of 128 (unmasked vst).
    HW_pad = ((HW + 127) // 128) * 128

    # Pick Bn (images per grid step): block ~0.5-2 MiB, but keep >= 2 grid
    # steps when N > 1 (v7x has 2 TensorCores per chip).
    per_image = C * HW_pad * itemsize
    Bn = max(1, min(N, target_block_bytes // per_image))
    if N > 1 and -(-N // Bn) < 2:
        Bn = max(1, -(-N // 2))
    grid_n = -(-N // Bn)
    N_pad = grid_n * Bn

    x_flat = x.reshape(N, C, HW)
    if N_pad != N or HW_pad != HW:
        x_flat = jnp.pad(x_flat, ((0, N_pad - N), (0, 0), (0, HW_pad - HW)))

    # Transposed weights so the SE MLP is (Bn, C) @ (C, C_sq) etc. (row-major,
    # batched over Bn); biases as lane-dense rows.
    w1_t = w_reduce.T                       # (C, C_sq)
    w2_t = w_expand.T                       # (C_sq, C)
    b1 = b_reduce.reshape(1, C_sq)
    b2 = b_expand.reshape(1, C)

    # VMEM budget: input + output blocks, each double-buffered (~4x block),
    # plus resident weights and headroom. Capped well below v7x's 64 MiB.
    block_bytes = Bn * per_image
    weight_bytes = (w1_t.size + w2_t.size + b1.size + b2.size) * 4
    vmem_bytes = 4 * block_bytes + weight_bytes + (4 << 20)
    vmem_bytes = int(min(max(vmem_bytes, 16 << 20), 48 << 20))

    cost = pl.CostEstimate(
        flops=3 * N * C * HW + 4 * N * C * C_sq,
        transcendentals=N * (C + C_sq),
        bytes_accessed=2 * N * C * HW * itemsize + weight_bytes,
    )

    kernel = functools.partial(_se_kernel, inv_hw=1.0 / float(HW))

    out_flat = pl.pallas_call(
        kernel,
        out_shape=jax.ShapeDtypeStruct((N_pad, C, HW_pad), dtype),
        grid_spec=pltpu.PrefetchScalarGridSpec(
            num_scalar_prefetch=0,
            grid=(grid_n,),
            in_specs=[
                pl.BlockSpec((Bn, C, HW_pad), lambda n: (n, 0, 0)),
                pl.BlockSpec((C, C_sq), lambda n: (0, 0)),
                pl.BlockSpec((1, C_sq), lambda n: (0, 0)),
                pl.BlockSpec((C_sq, C), lambda n: (0, 0)),
                pl.BlockSpec((1, C), lambda n: (0, 0)),
            ],
            out_specs=pl.BlockSpec((Bn, C, HW_pad), lambda n: (n, 0, 0)),
        ),
        compiler_params=pltpu.CompilerParams(
            dimension_semantics=("parallel",),
            vmem_limit_bytes=vmem_bytes,
        ),
        cost_estimate=cost,
    )(x_flat, w1_t, b1, w2_t, b2)

    return out_flat[:N, :, :HW].reshape(N, C, H, W)


def _reference(x, w_reduce, b_reduce, w_expand, b_expand):
    # pure-JAX reference for correctness check
    mean = jnp.mean(x, axis=(2, 3))                            # (N, C)
    s = mean @ w_reduce.T + b_reduce                           # (N, C_sq)
    s = jnp.where(s > 0, s, 0.1 * s)                           # leaky_relu(0.1)
    e = s @ w_expand.T + b_expand                              # (N, C)
    scale = jax.nn.sigmoid(e)[:, :, None, None]
    return scale * x


def _run_case(key, N, C, H, W, ratio=0.25):
    C_sq = max(1, int(C * ratio))
    kx, kw1, kb1, kw2, kb2 = jax.random.split(key, 5)
    x = jax.random.normal(kx, (N, C, H, W), dtype=jnp.float32)
    w_reduce = 0.1 * jax.random.normal(kw1, (C_sq, C), dtype=jnp.float32)
    b_reduce = 0.1 * jax.random.normal(kb1, (C_sq,), dtype=jnp.float32)
    w_expand = 0.1 * jax.random.normal(kw2, (C, C_sq), dtype=jnp.float32)
    b_expand = 0.1 * jax.random.normal(kb2, (C,), dtype=jnp.float32)

    out = squeeze_and_excite(x, w_reduce, b_reduce, w_expand, b_expand)
    out = jax.block_until_ready(out)
    ref = _reference(x, w_reduce, b_reduce, w_expand, b_expand)
    assert jnp.allclose(out, ref, atol=1e-5, rtol=1e-5), "mismatch vs reference"


if __name__ == "__main__":
    key = jax.random.PRNGKey(0)
    k0, k1 = jax.random.split(key)

    # SqueezeAndExciteLayer(input_filters=4, output_filters=4, ratio=0.25)
    _run_case(k0, N=2, C=4, H=16, W=16)       # HW already a multiple of 128
    # non-128-multiple spatial size + batch padding path
    _run_case(k1, N=3, C=4, H=5, W=5)

    print("KERNEL_OK")
</pallas_src>

<mosaic_0001>
module attributes {stable_mosaic.version = 11 : i64} {
  func.func @_se_kernel(%arg0: i32, %arg1: memref<1x4x256xf32, #tpu.memory_space<vmem>>, %arg2: memref<4x1xf32, #tpu.memory_space<vmem>>, %arg3: memref<1x1xf32, #tpu.memory_space<vmem>>, %arg4: memref<1x4xf32, #tpu.memory_space<vmem>>, %arg5: memref<1x4xf32, #tpu.memory_space<vmem>>, %arg6: memref<1x4x256xf32, #tpu.memory_space<vmem>>) attributes {dimension_semantics = [#tpu.dimension_semantics<parallel>], iteration_bounds = array<i64: 2>, scalar_prefetch = 0 : i64, scratch_operands = 0 : i64, tpu.core_type = #tpu.core_type<tc>, window_params = [{transform_indices = @transform_0, window_bounds = array<i64: 1, 4, 256>}, {pipeline_mode = #tpu.pipeline_mode<synchronous>, transform_indices = @transform_1, window_bounds = array<i64: 4, 1>}, {pipeline_mode = #tpu.pipeline_mode<synchronous>, transform_indices = @transform_2, window_bounds = array<i64: 1, 1>}, {pipeline_mode = #tpu.pipeline_mode<synchronous>, transform_indices = @transform_3, window_bounds = array<i64: 1, 4>}, {pipeline_mode = #tpu.pipeline_mode<synchronous>, transform_indices = @transform_4, window_bounds = array<i64: 1, 4>}, {transform_indices = @transform_5, window_bounds = array<i64: 1, 4, 256>}]} {
    %c0 = arith.constant 0 : index
    %c0_0 = arith.constant 0 : index
    %c0_1 = arith.constant 0 : index
    %0 = vector.load %arg1[%c0, %c0_0, %c0_1] : memref<1x4x256xf32, #tpu.memory_space<vmem>>, vector<1x4x256xf32>
    %cst = arith.constant dense<0.000000e+00> : vector<1x4xf32>
    %1 = vector.multi_reduction <add>, %0, %cst [2] : vector<1x4x256xf32> to vector<1x4xf32>
    %cst_2 = arith.constant 3.906250e-03 : f32
    %2 = vector.broadcast %cst_2 : f32 to vector<1x4xf32>
    %3 = arith.mulf %1, %2 : vector<1x4xf32>
    %c0_3 = arith.constant 0 : index
    %c0_4 = arith.constant 0 : index
    %4 = vector.load %arg2[%c0_3, %c0_4] : memref<4x1xf32, #tpu.memory_space<vmem>>, vector<4x1xf32>
    %cst_5 = arith.constant dense<0.000000e+00> : vector<1x1xf32>
    %5 = tpu.matmul %3, %4, %cst_5 {dimension_numbers = #tpu.dot_dimension_numbers<[1], [0], [0], [1], [0, 0, 1, 1], [], []>} : vector<1x4xf32>, vector<4x1xf32>, vector<1x1xf32> -> vector<1x1xf32>
    %c0_6 = arith.constant 0 : index
    %c0_7 = arith.constant 0 : index
    %6 = vector.load %arg3[%c0_6, %c0_7] : memref<1x1xf32, #tpu.memory_space<vmem>>, vector<1x1xf32>
    %7 = arith.addf %5, %6 : vector<1x1xf32>
    %cst_8 = arith.constant 0.000000e+00 : f32
    %8 = vector.broadcast %cst_8 : f32 to vector<1x1xf32>
    %9 = arith.cmpf ogt, %7, %8 : vector<1x1xf32>
    %cst_9 = arith.constant 1.000000e-01 : f32
    %10 = vector.broadcast %cst_9 : f32 to vector<1x1xf32>
    %11 = arith.mulf %10, %7 : vector<1x1xf32>
    %12 = arith.select %9, %7, %11 : vector<1x1xi1>, vector<1x1xf32>
    %c0_10 = arith.constant 0 : index
    %c0_11 = arith.constant 0 : index
    %13 = vector.load %arg4[%c0_10, %c0_11] : memref<1x4xf32, #tpu.memory_space<vmem>>, vector<1x4xf32>
    %cst_12 = arith.constant dense<0.000000e+00> : vector<1x4xf32>
    %14 = tpu.matmul %12, %13, %cst_12 {dimension_numbers = #tpu.dot_dimension_numbers<[1], [0], [0], [1], [0, 0, 1, 1], [], []>} : vector<1x1xf32>, vector<1x4xf32>, vector<1x4xf32> -> vector<1x4xf32>
    %c0_13 = arith.constant 0 : index
    %c0_14 = arith.constant 0 : index
    %15 = vector.load %arg5[%c0_13, %c0_14] : memref<1x4xf32, #tpu.memory_space<vmem>>, vector<1x4xf32>
    %16 = arith.addf %14, %15 : vector<1x4xf32>
    %17 = arith.negf %16 : vector<1x4xf32>
    %18 = math.exp %17 : vector<1x4xf32>
    %cst_15 = arith.constant 1.000000e+00 : f32
    %19 = vector.broadcast %cst_15 : f32 to vector<1x4xf32>
    %20 = arith.addf %19, %18 : vector<1x4xf32>
    %21 = arith.divf %19, %20 : vector<1x4xf32>
    %22 = vector.shape_cast %21 : vector<1x4xf32> to vector<1x4x1xf32>
    %23 = vector.broadcast %22 : vector<1x4x1xf32> to vector<1x4x256xf32>
    %24 = arith.mulf %0, %23 : vector<1x4x256xf32>
    %c0_16 = arith.constant 0 : index
    %c0_17 = arith.constant 0 : index
    %c0_18 = arith.constant 0 : index
    %25 = vector.load %arg6[%c0_16, %c0_17, %c0_18] : memref<1x4x256xf32, #tpu.memory_space<vmem>>, vector<1x4x256xf32>
    tpu.vector_store %arg6[%c0_16, %c0_17, %c0_18], %24 {strides = array<i32>} : memref<1x4x256xf32, #tpu.memory_space<vmem>>, vector<1x4x256xf32>,
    return
  }
  func.func @transform_0(%arg0: i32) -> (i32, i32, i32) {
    %c0_i32 = arith.constant 0 : i32
    %c0_i32_0 = arith.constant 0 : i32
    %c0_i32_1 = arith.constant 0 : i32
    return %arg0, %c0_i32, %c0_i32_0 : i32, i32, i32
  }
  func.func @transform_1(%arg0: i32) -> (i32, i32) {
    %c0_i32 = arith.constant 0 : i32
    %c0_i32_0 = arith.constant 0 : i32
    %c0_i32_1 = arith.constant 0 : i32
    return %c0_i32, %c0_i32_0 : i32, i32
  }
  func.func @transform_2(%arg0: i32) -> (i32, i32) {
    %c0_i32 = arith.constant 0 : i32
    %c0_i32_0 = arith.constant 0 : i32
    %c0_i32_1 = arith.constant 0 : i32
    return %c0_i32, %c0_i32_0 : i32, i32
  }
  func.func @transform_3(%arg0: i32) -> (i32, i32) {
    %c0_i32 = arith.constant 0 : i32
    %c0_i32_0 = arith.constant 0 : i32
    %c0_i32_1 = arith.constant 0 : i32
    return %c0_i32, %c0_i32_0 : i32, i32
  }
  func.func @transform_4(%arg0: i32) -> (i32, i32) {
    %c0_i32 = arith.constant 0 : i32
    %c0_i32_0 = arith.constant 0 : i32
    %c0_i32_1 = arith.constant 0 : i32
    return %c0_i32, %c0_i32_0 : i32, i32
  }
  func.func @transform_5(%arg0: i32) -> (i32, i32, i32) {
    %c0_i32 = arith.constant 0 : i32
    %c0_i32_0 = arith.constant 0 : i32
    %c0_i32_1 = arith.constant 0 : i32
    return %arg0, %c0_i32, %c0_i32_0 : i32, i32, i32
  }
}

</mosaic_0001>

<bundles_post_ra>
// kernel: tpu_custom_call.1
= control target key start
LH: loop header
LB: loop body
LE: loop exit
PB: predicated region body
PF: predicated region fallthrough
CT: control target
= control target key end

     0   :  { %s930_s0 = inlined_call_operand.hbm [shape: f32[2,4,256], index: 0, kind: input, shape index: {}]   ;;  %s931_s1 = inlined_call_operand.vmem [shape: f32[4,1], index: 1, kind: input, shape index: {}]   ;;  %s932_s2 = inlined_call_operand.<no memory space> [shape: f32[1,1], index: 2, kind: input, shape index: {}]   ;;  %s933_s3 = inlined_call_operand.vmem [shape: f32[1,4], index: 3, kind: input, shape index: {}]   ;;  %s934_s4 = inlined_call_operand.vmem [shape: f32[1,4], index: 4, kind: input, shape index: {}]   ;;  %s935_s5 = inlined_call_operand.hbm [shape: f32[2,4,256], index: 5, kind: output, shape index: {}]  }
   0x1   :  { %v10_v0 = vstv %s932_s2 }
   0x2   :  { %11 = vst [vmem:[#allocation2] sm:$0x1] %v10_v0 }
   0x3   :  { %12 = vsyncpa [#allocation4], 0 }
   0x4   :  { %14 = vsyncpa [#allocation4 + $0x1], 0 }
   0x5   :  { %15 = vsyncpa [#allocation5], 0 }
   0x6   :  { %17 = vsyncpa [#allocation5 + $0x1], 0  ;;  %s756_s20 = smov 0   ;;  %s758_s21 = smov 0  }
   0x7   :  { %s760_s22 = smov 0   ;;  %s762_s23 = smov 0  }
   0x8 LB: > { %s777_s2 = sadd.s32 4294967295, %s716_s23   ;;  %s531_s24 = sadd.s32 4294967294, %s716_s23   ;;  %s716_s23 = sphi %s762_s23, %s950_s23   ;;  %s712_s22 = sphi %s760_s22, %s949_s22   ;;  %s708_s21 = sphi %s758_s21, %s948_s21   ;;  %s704_s20 = sphi %s756_s20, %s947_s20  }
   0x9   : > { %s781_s25 = sadd.s32 1, %s716_s23   ;;  %s30_s26 = sadd.s32 1, %s712_s22 }
   0xa   : > { %s27_s27 = ssub.s32 %s716_s23, %s781_s25  ;;  %p37_p0 = scmp.ne.s32.totalorder %s712_s22, %s708_s21 }
   0xb   : > { %p28_p1 = scmp.eq.s32.totalorder %s27_s27, 0  ;;  %p38_p2 = scmp.eq.s32.totalorder %s716_s23, 0 }
   0xc   : > { %p43_p3 = scmp.ne.s32.totalorder %s708_s21, %s704_s20  ;;  %p44_p4 = scmp.eq.s32.totalorder %s777_s2, 0 }
   0xd   : > { %s793_s28 = scalar_select %p28_p1, %s712_s22, %s30_s26  }
   0xe   : > { %p795_p5 = por %p38_p2, %p37_p0  ;;  %p799_p6 = por %p44_p4, %p43_p3 }
   0xf   : > { %p151_p7 = scmp.eq.s32.totalorder %s777_s2, 1  ;;  %p157_p8 = scmp.eq.s32.totalorder %s531_s24, 1 }
  0x10   : > { %p578_p10 = scmp.lt.s32.totalorder %s716_s23, 2  ;;  %s189_s8 = sand.u32 1, %s712_s22  }
  0x11   : > { %p806_p11 = por %p151_p7, %p37_p0  ;;  %p810_p12 = por %p157_p8, %p43_p3 }
  0x12   : > { %s550_s9 = sshll.u32 %s716_s23, 7  ;;  %s534_s10 = sshll.u32 %s189_s8, 3 }
  0x13   : > { %s939_s6 = scalar_select %p806_p11, 1, 0 }
  0x14   : > { %s940_s7 = scalar_select %p810_p12, 1, 0 }
  0x15   : > { %s819_s13 = scalar_lea.hbm %s930_s0, %s550_s9  ;;  %s193_s14 = scalar_lea.vmem [#allocation3], %s534_s10 }
  0x16   : > { %s201_s15 = sshll.u32 %s193_s14, 4  ;;  %p823_p13 = pnand %p578_p10, %p795_p5  ;;  %s827_s15 = int_to_ptr.vmem [resolvable:$true] %s201_s15 }
  0x17   : > { %s190_s17 = scalar_lea.sflag [#allocation4], %s189_s8  ;;  %s620_s18 = scalar_lea.hbm %s819_s13, 128 }
  0x18   : > { %p621_p2 = scmp.ne.s32.totalorder %s819_s13, %s620_s18  ;;  %p622_p3 = pneg %p823_p13 }
  0x19   : > { %s625_s26 = scalar_lea.hbm %s930_s0, 256  ;;  %p626_p5 = scmp.lt.u32.totalorder %s819_s13, %s930_s0 }
  0x1a   : > { %p623_p4 = pnand %p622_p3, %p621_p2  ;;  %p627_p8 = scmp.lt.u32.totalorder %s625_s26, %s620_s18 }
  0x1b   : > { %p629_p9 = scmp.lt.u32.totalorder %s620_s18, %s819_s13 }
  0x1c   : > { %p624_p7 = pneg %p623_p4  ;;  %p628_p10 = por %p627_p8, %p626_p5 }
  0x1e   : > { %p630_p0 = por %p629_p9, %p628_p10 }
  0x20   : > { %p631_p1 = pnand %p630_p0, %p624_p7 }
  0x22   : > { %634 = shalt.err (!%p631_p1)
}
  0x23   : > { %s635_s8 = scalar_lea.vmem %s827_s15, 128  ;;  %s718_s9 = smov [#allocation3]  }
  0x24   : > { %p636_p2 = scmp.ne.s32.totalorder %s827_s15, %s635_s8  ;;  %s640_s10 = sshll.u32 %s718_s9, 4  ;;  %s641_s10 = int_to_ptr.vmem [resolvable:$false] %s640_s10 }
  0x25   : > { %s642_s11 = scalar_lea.vmem %s641_s10, 256  ;;  %p643_p11 = scmp.lt.s32.totalorder %s827_s15, %s641_s10 }
  0x26   : > { %p638_p4 = pnand %p636_p2, %p622_p3  ;;  %p644_p5 = scmp.lt.s32.totalorder %s642_s11, %s635_s8 }
  0x28   : > { %p639_p12 = pneg %p638_p4  ;;  %p645_p8 = por %p644_p5, %p643_p11 }
  0x2a   : > { %p646_p9 = pnand %p645_p8, %p639_p12 }
  0x2c   : > { %649 = shalt.err (!%p646_p9)
}
  0x2d   : > { %573 = dma.hbm_to_vmem [thread:$0]  (!%p823_p13), %s819_s13, 128, %s827_s15, %s190_s17  }
  0x2e   : > { %p942_p0 = scmp.lt.s32.totalorder %s716_s23, 3  ;;  %p943_p1 = scmp.ge.s32.totalorder %s716_s23, 1 }
  0x30   : > { %p207_p3 = pnand %p943_p1, %p942_p0 }
  0x31   : > { %s861_s12 = sand.u32 (!%p207_p3), 1, %s708_s21  }
  0x32   : > { %210 = sbr.rel (%p207_p3) target bundleno = 802 (0x322), region = 40  ;;  %s538_s14 = sshll.u32 (!%p207_p3), %s861_s12, 3 }
  0x33   : > { %s213_s18 = scalar_lea.sflag (!%p207_p3), [#allocation4], %s861_s12  ;;  %s216_s16 = scalar_lea.vmem (!%p207_p3), [#allocation3], %s538_s14 }
  0x39   : > { %695 = dma.done.wait (%p799_p6), %s213_s18, 128  }
  0x3a   : > { %697 = vsyncadd (%p799_p6), %s213_s18, 4294967168  ;;  %vm247_vm0 = vcmask 1043456   ;;  %v243_v1 = vld [vmem:[%s216_s16] sm:$0xff]  ;;  %v719_v6 = vmov 0.0   ;;  %vm720_vm1 = vmmov 0   ;;  %v257_v8 = vlaneseq  ;;  %s551_s26 = sshll.u32 %s777_s2, 7 }
  0x3b   : > { %v245_v2 = vcombine.high %v243_v1, %v243_v1  ;;  %v248_v3 = vsel %vm247_vm0, %v243_v1, 0.0  ;;  %556 = vmatprep.subr.mxu0 %v719_v6  ;;  %v254_v7 = vld [vmem:[%s931_s1] sm:$0xf]  ;;  %561 = vmatprep.subr.mxu1 %v719_v6  ;;  %vm263_vm2 = vcmask 31744   ;;  %vm348_vm3 = vcmask 1040384   ;;  %s242_s27 = scalar_lea.vmem [#allocation6], %s538_s14  ;;  %s886_s10 = scalar_lea.hbm %s935_s5, %s551_s26 }
  0x3c   : > { %557 = vmatpush3.msk.msra.mxu0 %vm247_vm0, %v254_v7  ;;  %558 = vmatprep.mubr.msk.f32.mxu0 %vm720_vm1, %v719_v6  ;;  %v258_v9 = vand.u32 127, %v257_v8  ;;  %v260_v10 = vshrl.u32 %v257_v8, 7  ;;  %v342_v15 = vld [vmem:[%s933_s3] sm:$0x1]  ;;  %vm344_vm5 = vcmask 7168   ;;  %s461_s29 = sshll.u32 %s242_s27, 4  ;;  %s888_s29 = int_to_ptr.vmem [resolvable:$true] %s461_s29 }
  0x3d   : > { %v249_v4 = vsel %vm247_vm0, %v245_v2, 0.0  ;;  %563 = vmatprep.mubr.msk.f32.mxu1 %vm720_vm1, %v719_v6  ;;  %562 = vmatpush3.msk.msra.mxu1 %vm348_vm3, %v342_v15  ;;  %v255_v16 = vld [vmem:[#allocation2] sm:$0x1]  ;;  %v721_v32 = vmov 839922192   ;;  %s447_s11 = scalar_lea.sflag [#allocation5], %s861_s12 }
  0x3e   : > { %v250_v5 = vadd.f32 %v249_v4, %v248_v3  ;;  %v261_v11 = vsub.s32 %v258_v9, %v260_v10  ;;  %v343_v22 = vld [vmem:[%s934_s4] sm:$0x1]  ;;  %v430_v29 = vsub.s32 0, %v260_v10  ;;  %v437_v33 = vunpack.c.l.s4 %v721_v32  ;;  %s650_s18 = scalar_lea.vmem %s888_s29, 128  ;;  %p944_p11 = scmp.ne.s32.totalorder %s939_s6, 0 }
  0x3f   : > { %p651_p6 = scmp.ne.s32.totalorder %s888_s29, %s650_s18  ;;  %s722_s2 = smov [#allocation6]  }
  0x40   : > { %251 = vadd.xlane.f32.xlu0 %v250_v5  ;;  %v438_v34 = vunpack.c.0.s8 %v437_v33  ;;  %s654_s14 = sshll.u32 %s722_s2, 4  ;;  %s655_s14 = int_to_ptr.vmem [resolvable:$false] %s654_s14 }
  0x41   : > { %p652_p12 = pnand %p651_p6, %p944_p11  ;;  %s656_s16 = scalar_lea.vmem %s655_s14, 256 }
  0x42   : > { %v441_v35 = vsub.s32 %v438_v34, %v260_v10  ;;  %p657_p7 = scmp.lt.s32.totalorder %s888_s29, %s655_s14  ;;  %p658_p10 = scmp.lt.s32.totalorder %s656_s16, %s650_s18 }
  0x43   : > { %p653_p13 = pneg %p652_p12 }
  0x44   : > { %p659_p2 = por %p658_p10, %p657_p7 }
  0x46   : > { %p660_p4 = pnand %p659_p2, %p653_p13 }
  0xcd   : > { %v252_v12 = vpop.xlane.xlu0 %251 }
  0xce   : > { %v253_v13 = vmul.f32 0.00390625, %v252_v12 }
  0xd0   : > { %v262_v14 = vrot.slane %v253_v13, %v261_v11 }
  0xd2   : > { %559 = vmatmul.mubr.msk.f32.vlgmr.msra.gmra.mrb[0].mxu0 %vm263_vm2, %v262_v14 }
 0x1a5   : > { %v335_v17 = vpop.f32.mrb[0].mxu0 }
 0x1a6   : > { %v336_v18 = vadd.f32 %v335_v17, %v255_v16  ;;  %v560_v19 = vpop.f32.mrb[1].mxu0 }
 0x1a8   : > { %vm339_vm4 = vcmp.gt.f32.partialorder %v336_v18, 0.0  ;;  %v340_v20 = vmul.f32 0.1, %v336_v18 }
 0x1aa   : > { %v341_v21 = vsel %vm339_vm4, %v336_v18, %v340_v20 }
 0x1ab   : > { %564 = vmatmul.mubr.msk.f32.vlgmr.msra.gmra.mrb[0].mxu1 %vm344_vm5, %v341_v21 }
 0x27e   : > { %v418_v23 = vpop.f32.mrb[0].mxu1 }
 0x27f   : > { %v419_v24 = vadd.f32 %v418_v23, %v343_v22  ;;  %v565_v25 = vpop.f32.mrb[1].mxu1 }
 0x281   : > { %v544_v26 = vmul.f32 -1.442695, %v419_v24 }
 0x283   : > { %616 = vpow2.f32 %v544_v26 }
 0x28d   : > { %v617_v27 = vpop.eup %616 }
 0x28e   : > { %v425_v28 = vadd.f32 1.0, %v617_v27 }
 0x290   : > { %618 = vrcp.f32 %v425_v28 }
 0x29a   : > { %v619_v30 = vpop.eup %618 }
 0x29b   : > { %v431_v31 = vrot.slane %v619_v30, %v430_v29 }
 0x29d   : > { %433 = vbcast.lane.b32.xlu0 %v431_v31, 256 }
 0x30f   : > { %v434_v36 = vpop.permute.xlu0 %433 }
 0x310   : > { %v442_v37 = vrot.slane %v434_v36, %v441_v35 }
 0x312   : > { %v444_v38 = vmul.f32 %v442_v37, %v243_v1 }
 0x314   : > { %445 = vst [vmem:[%s242_s27] sm:$0xff] %v444_v38 }
 0x315   : > { %663 = shalt.err (!%p660_p4)
}
 0x316   : > { %s664_s12 = scalar_lea.hbm %s886_s10, 128  ;;  %s668_s30 = scalar_lea.hbm %s935_s5, 256 }
 0x317   : > { %p665_p5 = scmp.ne.s32.totalorder %s886_s10, %s664_s12  ;;  %p669_p0 = scmp.lt.u32.totalorder %s886_s10, %s935_s5 }
 0x318   : > { %p670_p1 = scmp.lt.u32.totalorder %s668_s30, %s664_s12  ;;  %p672_p6 = scmp.lt.u32.totalorder %s664_s12, %s886_s10 }
 0x319   : > { %p666_p8 = pnand %p665_p5, %p944_p11 }
 0x31a   : > { %p671_p3 = por %p670_p1, %p669_p0 }
 0x31b   : > { %p667_p9 = pneg %p666_p8 }
 0x31c   : > { %p673_p12 = por %p672_p6, %p671_p3 }
 0x31e   : > { %p674_p13 = pnand %p673_p12, %p667_p9 }
 0x320   : > { %677 = shalt.err (!%p674_p13)
}
 0x321   : > { %568 = dma.vmem_to_hbm [thread:$0]  (%p944_p11), %s888_s29, 128, %s886_s10, %s447_s11  }
 0x322 PF: > { %s473_s24 = sand.u32 1, %s704_s20   ;;  %p945_p7 = scmp.ne.s32.totalorder %s940_s7, 0 }
 0x323   : > { %p946_p10 = scmp.ge.s32.totalorder %s716_s23, 2  ;;  %s474_s26 = scalar_lea.sflag [#allocation5], %s473_s24 }
 0x325   : > { %p575_p2 = pnand %p946_p10, %p945_p7 }
 0x327   : > { %699 = dma.done.wait (!%p575_p2), %s474_s26, 128  }
 0x328   : > { %701 = vsyncadd (!%p575_p2), %s474_s26, 4294967168  ;;  %p20_p4 = scmp.ge.s32.totalorder %s781_s25, 4   ;;  %s947_s20 = smov %s708_s21 }
 0x329   : > { %s948_s21 = smov %s712_s22  ;;  %s949_s22 = smov %s793_s28 }
 0x32a   : > { %s950_s23 = smov %s781_s25  ;;  %22 = sbr.rel (!%p20_p4) target bundleno = 8 (0x8), region = 85 }
 0x331   :  { %479 = vsyncpa [#allocation4], 1 }
 0x332   :  { %481 = vsyncpa [#allocation4 + $0x1], 1 }
 0x333   :  { %482 = vsyncpa [#allocation5], 1 }
 0x334   :  { %484 = vsyncpa [#allocation5 + $0x1], 1 }

</bundles_post_ra>
